<compile_context>
chip_gen: v6e
topology: v6e:2x2x1
jax: 0.10.0
libtpu: 0.0.40
codegen_flags: <defaults>
</compile_context>

<pallas_src>
import jax
import jax.numpy as jnp
from jax.experimental import pallas as pl
from jax.experimental.pallas import tpu as pltpu

_LANE = 128


def _fullbn_kernel(params_ref, x_ref, o_ref):
    # params_ref: (2, tile_d) f32 block; row 0 = mean, row 1 = inv_std.
    mean = params_ref[0:1, :]        # (1, tile_d) f32
    inv_std = params_ref[1:2, :]     # (1, tile_d) f32
    x = x_ref[...].astype(jnp.float32)
    o_ref[...] = ((x - mean) * inv_std).astype(o_ref.dtype)


def full_batch_norm(x, var, mean, *, tile_n=512, tile_d=1024):
    """y = (x - mean) / sqrt(var + 1e-5) via a tiled, pipelined Pallas TPU kernel.

    x:    (N, D) float array
    var:  (D,)   pre-computed feature variance
    mean: (D,)   pre-computed feature mean
    """
    N, D = x.shape
    out_dtype = x.dtype
    itemsize = jnp.dtype(out_dtype).itemsize

    # --- Parameters stay f32 (match PyTorch f32 buffers); pad D to 128 lanes ---
    d_pad = pl.cdiv(D, _LANE) * _LANE
    mean32 = mean.astype(jnp.float32)
    var32 = var.astype(jnp.float32)
    x_in = x
    if d_pad != D:
        mean32 = jnp.pad(mean32, (0, d_pad - D))
        var32 = jnp.pad(var32, (0, d_pad - D), constant_values=1.0)
        x_in = jnp.pad(x, ((0, 0), (0, d_pad - D)))
    inv_std = 1.0 / jnp.sqrt(var32 + 1e-5)
    params = jnp.stack([mean32, inv_std], axis=0)  # (2, d_pad) f32, one resident buffer

    # --- Tile selection: sublane-aligned rows, 128-multiple lanes ---
    sublane = {4: 8, 2: 16, 1: 32}.get(itemsize, 8)
    if tile_n >= N:
        tile_n = N                                    # full-dim block: always legal
    else:
        tile_n = max(sublane, (tile_n // sublane) * sublane)
    tile_d = min(tile_d, d_pad)                       # d_pad is a multiple of 128

    grid = (pl.cdiv(N, tile_n), pl.cdiv(d_pad, tile_d))

    cost = pl.CostEstimate(
        flops=2 * N * D,
        transcendentals=0,
        bytes_accessed=2 * N * D * itemsize + 2 * D * 4,
    )

    out = pl.pallas_call(
        _fullbn_kernel,
        out_shape=jax.ShapeDtypeStruct((N, d_pad), out_dtype),
        grid_spec=pltpu.PrefetchScalarGridSpec(
            num_scalar_prefetch=0,
            grid=grid,
            in_specs=[
                # fused (mean, inv_std) rows: only re-DMA'd when the D-tile changes
                pl.BlockSpec((2, tile_d), lambda i, j: (0, j)),
                # x tile
                pl.BlockSpec((tile_n, tile_d), lambda i, j: (i, j)),
            ],
            out_specs=pl.BlockSpec((tile_n, tile_d), lambda i, j: (i, j)),
        ),
        compiler_params=pltpu.CompilerParams(
            dimension_semantics=("parallel", "parallel"),
            vmem_limit_bytes=32 * 1024 * 1024,
        ),
        cost_estimate=cost,
    )(params, x_in)

    if d_pad != D:
        out = out[:, :D]
    return out


if __name__ == "__main__":
    key = jax.random.PRNGKey(0)
    kx, kv, km = jax.random.split(key, 3)

    # Small shapes consistent with the module: batch=8, hidden=32.
    N, D = 8, 32
    x = jax.random.normal(kx, (N, D), dtype=jnp.float32)
    var = jax.random.uniform(kv, (D,), dtype=jnp.float32, minval=0.5, maxval=2.0)
    mean = jax.random.normal(km, (D,), dtype=jnp.float32)

    y = jax.block_until_ready(full_batch_norm(x, var, mean))
    y_ref = (x - mean[None, :]) * (1.0 / jnp.sqrt(var + 1e-5))[None, :]
    assert jnp.allclose(y, y_ref, atol=1e-5, rtol=1e-5), "mismatch vs reference (small)"

    # Second check exercising the 2-D tiled / multi-block pipelined path.
    k2x, k2v, k2m = jax.random.split(jax.random.PRNGKey(1), 3)
    N2, D2 = 1024, 384
    x2 = jax.random.normal(k2x, (N2, D2), dtype=jnp.float32)
    var2 = jax.random.uniform(k2v, (D2,), dtype=jnp.float32, minval=0.5, maxval=2.0)
    mean2 = jax.random.normal(k2m, (D2,), dtype=jnp.float32)
    y2 = jax.block_until_ready(full_batch_norm(x2, var2, mean2, tile_n=256, tile_d=128))
    y2_ref = (x2 - mean2[None, :]) * (1.0 / jnp.sqrt(var2 + 1e-5))[None, :]
    assert jnp.allclose(y2, y2_ref, atol=1e-5, rtol=1e-5), "mismatch vs reference (tiled)"

    print("KERNEL_OK")
</pallas_src>

<mosaic_0001>
module attributes {stable_mosaic.version = 11 : i64} {
  func.func @_fullbn_kernel(%arg0: i32, %arg1: i32, %arg2: memref<2x128xf32, #tpu.memory_space<vmem>>, %arg3: memref<8x128xf32, #tpu.memory_space<vmem>>, %arg4: memref<8x128xf32, #tpu.memory_space<vmem>>) attributes {dimension_semantics = [#tpu.dimension_semantics<parallel>, #tpu.dimension_semantics<parallel>], iteration_bounds = array<i64: 1, 1>, scalar_prefetch = 0 : i64, scratch_operands = 0 : i64, tpu.core_type = #tpu.core_type<tc>, window_params = [{transform_indices = @transform_0, window_bounds = array<i64: 2, 128>}, {transform_indices = @transform_1, window_bounds = array<i64: 8, 128>}, {transform_indices = @transform_2, window_bounds = array<i64: 8, 128>}]} {
    %c0 = arith.constant 0 : index
    %c0_0 = arith.constant 0 : index
    %0 = vector.load %arg2[%c0, %c0_0] : memref<2x128xf32, #tpu.memory_space<vmem>>, vector<1x128xf32>
    %c1 = arith.constant 1 : index
    %c0_1 = arith.constant 0 : index
    %1 = vector.load %arg2[%c1, %c0_1] : memref<2x128xf32, #tpu.memory_space<vmem>>, vector<1x128xf32>
    %c0_2 = arith.constant 0 : index
    %c0_3 = arith.constant 0 : index
    %2 = vector.load %arg3[%c0_2, %c0_3] : memref<8x128xf32, #tpu.memory_space<vmem>>, vector<8x128xf32>
    %3 = vector.broadcast %0 : vector<1x128xf32> to vector<8x128xf32>
    %4 = arith.subf %2, %3 : vector<8x128xf32>
    %5 = vector.broadcast %1 : vector<1x128xf32> to vector<8x128xf32>
    %6 = arith.mulf %4, %5 : vector<8x128xf32>
    %c0_4 = arith.constant 0 : index
    %c0_5 = arith.constant 0 : index
    %7 = vector.load %arg4[%c0_4, %c0_5] : memref<8x128xf32, #tpu.memory_space<vmem>>, vector<8x128xf32>
    tpu.vector_store %arg4[%c0_4, %c0_5], %6 {strides = array<i32>} : memref<8x128xf32, #tpu.memory_space<vmem>>, vector<8x128xf32>,
    return
  }
  func.func @transform_0(%arg0: i32, %arg1: i32) -> (i32, i32) {
    %c0_i32 = arith.constant 0 : i32
    %c0_i32_0 = arith.constant 0 : i32
    return %c0_i32, %arg1 : i32, i32
  }
  func.func @transform_1(%arg0: i32, %arg1: i32) -> (i32, i32) {
    %c0_i32 = arith.constant 0 : i32
    return %arg0, %arg1 : i32, i32
  }
  func.func @transform_2(%arg0: i32, %arg1: i32) -> (i32, i32) {
    %c0_i32 = arith.constant 0 : i32
    return %arg0, %arg1 : i32, i32
  }
}

</mosaic_0001>

<bundles_post_ra>
// kernel: tpu_custom_call.1
= control target key start
LH: loop header
LB: loop body
LE: loop exit
PB: predicated region body
PF: predicated region fallthrough
CT: control target
= control target key end

     0   :  { %7 = vsyncpa [#allocation3], 0  ;;  %s164_s0 = inlined_call_operand.hbm [shape: f32[2,128], index: 0, kind: input, shape index: {}]   ;;  %s165_s1 = inlined_call_operand.hbm [shape: f32[8,128], index: 1, kind: input, shape index: {}]   ;;  %s166_s2 = inlined_call_operand.hbm [shape: f32[8,128], index: 2, kind: output, shape index: {}]  }
   0x1   :  { %8 = vsyncpa [#allocation6], 0 }
   0x2   :  { %9 = vsyncpa [#allocation4], 0  ;;  %s137_s9 = smov [#allocation2]   ;;  %s138_s11 = smov [#allocation5]  }
   0x3   :  { %s16_s10 = sshll.u32 %s137_s9, 4  ;;  %s26_s12 = sshll.u32 %s138_s11, 4  ;;  %s17_s10 = int_to_ptr.vmem [resolvable:$true] %s16_s10  ;;  %s27_s12 = int_to_ptr.vmem [resolvable:$true] %s26_s12 }
   0x4   :  { %s79_s13 = scalar_lea.vmem %s17_s10, 32  ;;  %p84_p1 = scmp.lt.s32.totalorder %s17_s10, %s17_s10 }
   0x5   :  { %p80_p0 = scmp.ne.s32.totalorder %s17_s10, %s79_s13  ;;  %p85_p2 = scmp.lt.s32.totalorder %s79_s13, %s79_s13 }
   0x7   :  { %p86_p3 = por %p85_p2, %p84_p1 }
   0x9   :  { %p87_p4 = pnand %p86_p3, %p80_p0 }
   0xb   :  { %90 = shalt.err (!%p87_p4)
}
   0xc   :  { %19 = dma.hbm_to_vmem [thread:$0]  %s164_s0, 32, %s17_s10, [#allocation3]  }
   0xd   :  { %s99_s16 = scalar_lea.vmem %s27_s12, 128  ;;  %p104_p6 = scmp.lt.s32.totalorder %s27_s12, %s27_s12 }
   0xe   :  { %p100_p5 = scmp.ne.s32.totalorder %s27_s12, %s99_s16  ;;  %p105_p7 = scmp.lt.s32.totalorder %s99_s16, %s99_s16 }
  0x10   :  { %p106_p8 = por %p105_p7, %p104_p6 }
  0x12   :  { %p107_p9 = pnand %p106_p8, %p100_p5 }
  0x14   :  { %110 = shalt.err (!%p107_p9)
}
  0x15   :  { %29 = dma.hbm_to_vmem [thread:$0]  %s165_s1, 128, %s27_s12, [#allocation6]  }
  0x16   :  { %131 = dma.done.wait [#allocation3], 32  }
  0x17   :  { %132 = vsyncadd [#allocation3], 4294967264 }
  0x18   :  { %133 = dma.done.wait [#allocation6], 128  }
  0x19   :  { %134 = vsyncadd [#allocation6], 4294967168  ;;  %v66_v0 = vld [vmem:[#allocation2] ss:$0 sm:$0xff]  ;;  %v67_v1 = vld [vmem:[#allocation2 + $0x1] ss:$0 sm:$0xff] }
  0x1a   :  { %v38_v2 = vld [vmem:[#allocation5] sm:$0xff]  ;;  %s139_s19 = smov [#allocation7]  }
  0x1b   :  { %s56_s0 = sshll.u32 %s139_s19, 4  ;;  %v43_v3 = vsub.f32 %v38_v2, %v66_v0  ;;  %s57_s0 = int_to_ptr.vmem [resolvable:$true] %s56_s0 }
  0x1c   :  { %s111_s20 = scalar_lea.vmem %s57_s0, 128  ;;  %p116_p11 = scmp.lt.s32.totalorder %s57_s0, %s57_s0 }
  0x1d   :  { %v48_v4 = vmul.f32 %v67_v1, %v43_v3  ;;  %p112_p10 = scmp.ne.s32.totalorder %s57_s0, %s111_s20  ;;  %p117_p12 = scmp.lt.s32.totalorder %s111_s20, %s111_s20 }
  0x1f   :  { %49 = vst [vmem:[#allocation7] sm:$0xff] %v48_v4  ;;  %p118_p13 = por %p117_p12, %p116_p11 }
  0x21   :  { %p119_p0 = pnand %p118_p13, %p112_p10 }
  0x23   :  { %122 = shalt.err (!%p119_p0)
}
  0x24   :  { %59 = dma.vmem_to_hbm [thread:$0]  %s57_s0, 128, %s166_s2, [#allocation4]  }
  0x25   :  { %135 = dma.done.wait [#allocation4], 128  }
  0x26   :  { %136 = vsyncadd [#allocation4], 4294967168 }
  0x27   :  { %63 = vsyncpa [#allocation3], 1 }
  0x28   :  { %64 = vsyncpa [#allocation6], 1 }
  0x29   :  { %65 = vsyncpa [#allocation4], 1 }

</bundles_post_ra>
